<compile_context>
chip_gen: v6e
topology: v6e:2x2x1
jax: 0.10.0
libtpu: 0.0.40
codegen_flags: <defaults>
</compile_context>

<pallas_src>
import jax
import jax.numpy as jnp
import numpy as np
from jax.experimental import pallas as pl
from jax.experimental.pallas import tpu as pltpu


# ----------------------------- Pallas kernel -------------------------------

def stgcn_kernel(w_ref, x_ref, o_ref):
    # w_ref: (O, N+F)   fused weight [W @ (L + I) | bias], resident across steps
    # x_ref: (N+F, T)   lane-dense slab [x2 ; one-hot feature rows]
    # o_ref: (O, T)     sigmoid(W_aug @ x_aug), bias included by the matmul
    z = jnp.dot(w_ref[...], x_ref[...], preferred_element_type=jnp.float32)
    o_ref[...] = jax.nn.sigmoid(z).astype(o_ref.dtype)


# ------------------------------- wrapper ------------------------------------

def _round_up(v, m):
    return (v + m - 1) // m * m


def _pick_lane_tile(L, k_rows, o_rows, in_bytes, out_bytes,
                    vmem_budget=24 * 1024 * 1024, max_tile=2048):
    """Largest multiple-of-128 lane tile fitting the VMEM budget, preferring
    >= 2 grid steps (v7x megacore) whenever there is enough work."""
    lp128 = _round_up(max(L, 1), 128)
    resident_w = 2 * o_rows * k_rows * in_bytes                 # dbl-buffered weight
    per_lane = 2 * (k_rows * in_bytes + o_rows * out_bytes)     # dbl-buffered slabs
    cap = max(128, ((vmem_budget - resident_w) // per_lane) // 128 * 128)
    tile = min(max_tile, cap, lp128)
    if tile == lp128 and lp128 > 128:       # split so the parallel grid has >=2 steps
        tile = _round_up(lp128 // 2, 128)
    return tile


def stgcn_forward(x, laplacian, weight, bias, *,
                  compute_dtype=jnp.bfloat16, out_dtype=jnp.float32,
                  lane_tile=None, flat_output=False):
    """Fused STGCN forward.

    x: (B, N, F); laplacian: (N, N); weight: (O, N); bias: (O, F).
    Returns (B, O, F), or the lane-dense (O, B*F) slab when flat_output=True.
    """
    B, N, F = x.shape
    O = weight.shape[0]
    L = B * F
    K = N + F   # contraction dim of the bias-augmented matmul

    # ---- parameter-only algebraic fusion (done once) ------------------------
    # z = W @ (L @ x + x) + b  ==  (W @ (L + I)) @ x + b
    w_fused = weight @ (laplacian + jnp.eye(N, dtype=laplacian.dtype))       # (O, N)
    # Fold the bias into the matmul as F extra weight columns.
    w_aug = jnp.concatenate([w_fused, bias], axis=1).astype(compute_dtype)   # (O, K)

    # ---- lane-dense input: fold batch into the lane axis --------------------
    x2 = jnp.transpose(x, (1, 0, 2)).reshape(N, L)                           # (N, B*F)
    # One-hot "which feature is this lane" rows; 0/1 are exact in bf16, so the
    # bias is added exactly once per (valid) lane by the matmul.
    onehot = jnp.tile(jnp.eye(F, dtype=x.dtype), (1, B))                     # (F, B*F)
    x_aug = jnp.concatenate([x2, onehot], axis=0).astype(compute_dtype)      # (K, B*F)

    in_bytes = np.dtype(compute_dtype).itemsize
    out_bytes = np.dtype(out_dtype).itemsize
    if lane_tile is None:
        lane_tile = _pick_lane_tile(L, K, O, in_bytes, out_bytes)
    Lp = _round_up(L, lane_tile)
    if Lp != L:                      # pad only when needed (padded lanes: z = 0)
        x_aug = jnp.pad(x_aug, ((0, 0), (0, Lp - L)))
    n_tiles = Lp // lane_tile

    out = pl.pallas_call(
        stgcn_kernel,
        out_shape=jax.ShapeDtypeStruct((O, Lp), out_dtype),
        grid_spec=pltpu.PrefetchScalarGridSpec(
            num_scalar_prefetch=0,
            grid=(n_tiles,),
            in_specs=[
                pl.BlockSpec((O, K), lambda j: (0, 0)),           # resident weight+bias
                pl.BlockSpec((K, lane_tile), lambda j: (0, j)),   # input slab
            ],
            out_specs=pl.BlockSpec((O, lane_tile), lambda j: (0, j)),
        ),
        compiler_params=pltpu.CompilerParams(
            dimension_semantics=("parallel",),
            vmem_limit_bytes=48 * 1024 * 1024,
        ),
    )(w_aug, x_aug)

    out = out[:, :L] if Lp != L else out
    if flat_output:                  # lane-dense (O, B*F) for fused consumers
        return out
    return jnp.transpose(out.reshape(O, B, F), (1, 0, 2))


# ----------------------- parameter / buffer construction -------------------

def calculate_laplacian_with_self_loop(adj):
    """D^{-1/2} (A + I) D^{-1/2}, matching the usual TGCN/STGCN helper."""
    adj = adj + jnp.eye(adj.shape[0], dtype=adj.dtype)
    row_sum = adj.sum(axis=1)
    d_inv_sqrt = jnp.where(row_sum > 0, row_sum ** -0.5, 0.0)
    d_mat = jnp.diag(d_inv_sqrt)
    return d_mat @ adj @ d_mat


def xavier_uniform(key, shape, gain=1.0, dtype=jnp.float32):
    fan_in, fan_out = shape[1], shape[0]
    limit = gain * np.sqrt(6.0 / (fan_in + fan_out))
    return jax.random.uniform(key, shape, dtype=dtype, minval=-limit, maxval=limit)


# ------------------------------- reference ---------------------------------

def stgcn_reference(x, laplacian, weight, bias):
    # Unfused f32 form, exactly as the module's forward implies.
    h = jnp.einsum("nm,bmf->bnf", laplacian, x) + x
    z = jnp.einsum("on,bnf->bof", weight, h) + bias[None]
    return jax.nn.sigmoid(z)


# --------------------------------- main -------------------------------------

if __name__ == "__main__":
    key = jax.random.PRNGKey(0)
    k_adj, k_x, k_w, k_b, k_xw = jax.random.split(key, 5)

    N = 16   # num_nodes (input_dim)
    F = 8    # feature_dim
    O = 16   # output_dim

    # Deterministic synthetic adjacency (symmetric, non-negative, sparse-ish)
    a = jax.random.uniform(k_adj, (N, N), dtype=jnp.float32)
    adj = (a + a.T) * 0.5
    adj = adj * (adj > 0.5)
    laplacian = calculate_laplacian_with_self_loop(adj)

    # Parameters: xavier_uniform_ with gain('sigmoid') == 1.0
    weight = xavier_uniform(k_w, (O, N), gain=1.0)
    bias = xavier_uniform(k_b, (O, F), gain=1.0)

    # ---- toy config from the module (B=2): f32 path, tight tolerance --------
    B = 2
    x = jax.random.normal(k_x, (B, N, F), dtype=jnp.float32)
    ref = stgcn_reference(x, laplacian, weight, bias)

    out_f32 = jax.block_until_ready(
        stgcn_forward(x, laplacian, weight, bias, compute_dtype=jnp.float32))
    np.testing.assert_allclose(np.asarray(out_f32), np.asarray(ref),
                               rtol=1e-5, atol=1e-5)

    # bf16 streams (halved HBM traffic), f32 MXU accumulation & f32 sigmoid
    out_bf16 = jax.block_until_ready(
        stgcn_forward(x, laplacian, weight, bias, compute_dtype=jnp.bfloat16))
    np.testing.assert_allclose(np.asarray(out_bf16), np.asarray(ref),
                               rtol=0.0, atol=2e-2)

    # ---- wider config: B*F = 512 lanes -> 2 "parallel" steps of 256 lanes ---
    Bw = 64
    xw = jax.random.normal(k_xw, (Bw, N, F), dtype=jnp.float32)
    refw = stgcn_reference(xw, laplacian, weight, bias)
    outw = jax.block_until_ready(
        stgcn_forward(xw, laplacian, weight, bias, compute_dtype=jnp.bfloat16))
    np.testing.assert_allclose(np.asarray(outw), np.asarray(refw),
                               rtol=0.0, atol=2e-2)

    print("KERNEL_OK")
</pallas_src>

<mosaic_0001>
module attributes {stable_mosaic.version = 11 : i64} {
  func.func @stgcn_kernel(%arg0: i32, %arg1: memref<16x24xf32, #tpu.memory_space<vmem>>, %arg2: memref<24x128xf32, #tpu.memory_space<vmem>>, %arg3: memref<16x128xf32, #tpu.memory_space<vmem>>) attributes {dimension_semantics = [#tpu.dimension_semantics<parallel>], iteration_bounds = array<i64: 1>, scalar_prefetch = 0 : i64, scratch_operands = 0 : i64, tpu.core_type = #tpu.core_type<tc>, window_params = [{pipeline_mode = #tpu.pipeline_mode<synchronous>, transform_indices = @transform_0, window_bounds = array<i64: 16, 24>}, {transform_indices = @transform_1, window_bounds = array<i64: 24, 128>}, {transform_indices = @transform_2, window_bounds = array<i64: 16, 128>}]} {
    %c0 = arith.constant 0 : index
    %c0_0 = arith.constant 0 : index
    %0 = vector.load %arg1[%c0, %c0_0] : memref<16x24xf32, #tpu.memory_space<vmem>>, vector<16x24xf32>
    %c0_1 = arith.constant 0 : index
    %c0_2 = arith.constant 0 : index
    %1 = vector.load %arg2[%c0_1, %c0_2] : memref<24x128xf32, #tpu.memory_space<vmem>>, vector<24x128xf32>
    %cst = arith.constant dense<0.000000e+00> : vector<16x128xf32>
    %2 = tpu.matmul %0, %1, %cst {dimension_numbers = #tpu.dot_dimension_numbers<[1], [0], [0], [1], [0, 0, 1, 1], [], []>} : vector<16x24xf32>, vector<24x128xf32>, vector<16x128xf32> -> vector<16x128xf32>
    %3 = arith.negf %2 : vector<16x128xf32>
    %4 = math.exp %3 : vector<16x128xf32>
    %cst_3 = arith.constant 1.000000e+00 : f32
    %5 = vector.broadcast %cst_3 : f32 to vector<16x128xf32>
    %6 = arith.addf %5, %4 : vector<16x128xf32>
    %7 = arith.divf %5, %6 : vector<16x128xf32>
    %c0_4 = arith.constant 0 : index
    %c0_5 = arith.constant 0 : index
    %8 = vector.load %arg3[%c0_4, %c0_5] : memref<16x128xf32, #tpu.memory_space<vmem>>, vector<16x128xf32>
    tpu.vector_store %arg3[%c0_4, %c0_5], %7 {strides = array<i32>} : memref<16x128xf32, #tpu.memory_space<vmem>>, vector<16x128xf32>,
    return
  }
  func.func @transform_0(%arg0: i32) -> (i32, i32) {
    %c0_i32 = arith.constant 0 : i32
    %c0_i32_0 = arith.constant 0 : i32
    %c0_i32_1 = arith.constant 0 : i32
    return %c0_i32, %c0_i32_0 : i32, i32
  }
  func.func @transform_1(%arg0: i32) -> (i32, i32) {
    %c0_i32 = arith.constant 0 : i32
    %c0_i32_0 = arith.constant 0 : i32
    return %c0_i32, %arg0 : i32, i32
  }
  func.func @transform_2(%arg0: i32) -> (i32, i32) {
    %c0_i32 = arith.constant 0 : i32
    %c0_i32_0 = arith.constant 0 : i32
    return %c0_i32, %arg0 : i32, i32
  }
}

</mosaic_0001>

<bundles_post_ra>
// kernel: tpu_custom_call.1
= control target key start
LH: loop header
LB: loop body
LE: loop exit
PB: predicated region body
PF: predicated region fallthrough
CT: control target
= control target key end

     0   :  { %7 = vsyncpa [#allocation3], 0  ;;  %s294_s0 = inlined_call_operand.hbm [shape: f32[16,24], index: 0, kind: input, shape index: {}]   ;;  %s295_s1 = inlined_call_operand.hbm [shape: f32[24,128], index: 1, kind: input, shape index: {}]   ;;  %s296_s2 = inlined_call_operand.hbm [shape: f32[16,128], index: 2, kind: output, shape index: {}]  }
   0x1   :  { %8 = vsyncpa [#allocation6], 0 }
   0x2   :  { %9 = vsyncpa [#allocation4], 0  ;;  %s256_s9 = smov [#allocation2]  }
   0x3   :  { %s15_s10 = sshll.u32 %s256_s9, 4  ;;  %s16_s10 = int_to_ptr.vmem [resolvable:$true] %s15_s10 }
   0x4   :  { %s198_s11 = scalar_lea.vmem %s16_s10, 256  ;;  %p203_p1 = scmp.lt.s32.totalorder %s16_s10, %s16_s10 }
   0x5   :  { %p199_p0 = scmp.ne.s32.totalorder %s16_s10, %s198_s11  ;;  %p204_p2 = scmp.lt.s32.totalorder %s198_s11, %s198_s11 }
   0x7   :  { %p205_p3 = por %p204_p2, %p203_p1 }
   0x9   :  { %p206_p4 = pnand %p205_p3, %p199_p0 }
   0xb   :  { %209 = shalt.err (!%p206_p4)
}
   0xc   :  { %s257_s12 = smov 128   ;;  %s258_s13 = smov 8  }
   0xd   :  { %21 = dma.hbm_to_vmem [thread:$0]  %s294_s0, 256, %s16_s10, [#allocation3], %s257_s12, %s257_s12, %s258_s13  }
   0xe   :  { %s259_s16 = smov [#allocation5]  }
   0xf   :  { %s27_s17 = sshll.u32 %s259_s16, 4  ;;  %s28_s17 = int_to_ptr.vmem [resolvable:$true] %s27_s17 }
  0x10   :  { %s218_s18 = scalar_lea.vmem %s28_s17, 384  ;;  %p223_p6 = scmp.lt.s32.totalorder %s28_s17, %s28_s17 }
  0x11   :  { %p219_p5 = scmp.ne.s32.totalorder %s28_s17, %s218_s18  ;;  %p224_p7 = scmp.lt.s32.totalorder %s218_s18, %s218_s18 }
  0x13   :  { %p225_p8 = por %p224_p7, %p223_p6 }
  0x15   :  { %p226_p9 = pnand %p225_p8, %p219_p5 }
  0x17   :  { %229 = shalt.err (!%p226_p9)
}
  0x18   :  { %33 = dma.hbm_to_vmem [thread:$0]  %s295_s1, 384, %s28_s17, [#allocation6], %s257_s12, %s257_s12, %s258_s13  }
  0x19   :  { %250 = dma.done.wait [#allocation3], 256  }
  0x1a   :  { %251 = vsyncadd [#allocation3], 4294967040 }
  0x1b   :  { %252 = dma.done.wait [#allocation6], 384  }
  0x1c   :  { %253 = vsyncadd [#allocation6], 4294966912  ;;  %vm45_vm0 = vcmask 195584   ;;  %v44_v0 = vld [vmem:[#allocation5 + $0x10] sm:$0xff]  ;;  %v43_v1 = vld [vmem:[#allocation5 + $0x8] sm:$0xff]  ;;  %s260_s0 = smov [#allocation7]  }
  0x1d   :  { %168 = vmatprep.subr.mxu0 %v44_v0  ;;  %v40_v2 = vld [vmem:[#allocation2] sm:$0xff]  ;;  %v42_v3 = vld [vmem:[#allocation5] sm:$0xff]  ;;  %v41_v4 = vld [vmem:[#allocation2 + $0x8] sm:$0xff]  ;;  %s146_s1 = sshll.u32 %s260_s0, 4  ;;  %s147_s1 = int_to_ptr.vmem [resolvable:$true] %s146_s1 }
  0x1e   :  { %169 = vmatpush3.msra.mxu0 %v44_v0  ;;  %174 = vmatprep.mubr.msk.f32.mxu0 %vm45_vm0, %v40_v2  ;;  %s230_s21 = scalar_lea.vmem %s147_s1, 256  ;;  %p235_p11 = scmp.lt.s32.totalorder %s147_s1, %s147_s1 }
  0x1f   :  { %170 = vmatprep.subr.mxu0 %v43_v1  ;;  %p231_p10 = scmp.ne.s32.totalorder %s147_s1, %s230_s21  ;;  %p236_p12 = scmp.lt.s32.totalorder %s230_s21, %s230_s21 }
  0x20   :  { %171 = vmatpush3.msra.mxu0 %v43_v1 }
  0x21   :  { %172 = vmatprep.subr.mxu0 %v42_v3  ;;  %p237_p13 = por %p236_p12, %p235_p11 }
  0x22   :  { %173 = vmatpush3.msra.mxu0 %v42_v3 }
  0x23   :  { %175 = vmatmul.mubr.msk.f32.vlgmr.msra.gmra.mxu0 %vm45_vm0, %v41_v4  ;;  %p238_p0 = pnand %p237_p13, %p231_p10 }
  0xe3   :  { %v176_v5 = vpop.f32.mrf.mxu0 }
  0xe4   :  { %v162_v6 = vmul.f32 -1.442695, %v176_v5 }
  0xe5   :  { %v118_v7 = vpop.f32.mrf.mxu0 }
  0xe6   :  { %182 = vpow2.f32 %v162_v6  ;;  %v161_v8 = vmul.f32 -1.442695, %v118_v7 }
  0xe8   :  { %184 = vpow2.f32 %v161_v8 }
  0xf3   :  { %v183_v9 = vpop.eup %182 }
  0xf4   :  { %v134_v10 = vadd.f32 1.0, %v183_v9 }
  0xf5   :  { %v185_v11 = vpop.eup %184 }
  0xf6   :  { %186 = vrcp.f32 %v134_v10  ;;  %v133_v12 = vadd.f32 1.0, %v185_v11 }
  0xf8   :  { %188 = vrcp.f32 %v133_v12 }
 0x103   :  { %v187_v13 = vpop.eup %186 }
 0x104   :  { %140 = vst [vmem:[#allocation7 + $0x8] sm:$0xff] %v187_v13 }
 0x105   :  { %v189_v14 = vpop.eup %188 }
 0x106   :  { %139 = vst [vmem:[#allocation7] sm:$0xff] %v189_v14 }
 0x107   :  { %241 = shalt.err (!%p238_p0)
}
 0x108   :  { %152 = dma.vmem_to_hbm [thread:$0]  %s147_s1, 256, %s296_s2, [#allocation4], %s257_s12, %s257_s12, %s258_s13  }
 0x109   :  { %254 = dma.done.wait [#allocation4], 256  }
 0x10a   :  { %255 = vsyncadd [#allocation4], 4294967040 }
 0x10b   :  { %156 = vsyncpa [#allocation3], 1 }
 0x10c   :  { %157 = vsyncpa [#allocation6], 1 }
 0x10d   :  { %158 = vsyncpa [#allocation4], 1 }

</bundles_post_ra>
